<compile_context>
chip_gen: v5e
topology: v5e:2x2
jax: 0.10.0
libtpu: 0.0.40
codegen_flags: <defaults>
</compile_context>

<pallas_src>
import numpy as np
import jax
import jax.numpy as jnp
from jax.experimental import pallas as pl
from jax.experimental.pallas import tpu as pltpu


# ----------------------------------------------------------------------------
# Pallas kernel: per-atom MLP (Linear+CELU x3, Linear) + per-molecule atom sum
# ----------------------------------------------------------------------------
def _mlp_mol_kernel(x_ref, w0_ref, b0_ref, w1_ref, b1_ref, w2_ref, b2_ref,
                    w3_ref, b3_ref, out_ref):
    alpha = 0.1

    def celu(v):
        # torch.nn.CELU(alpha): max(0,x) + min(0, alpha*(exp(x/alpha)-1))
        neg = alpha * (jnp.exp(jnp.minimum(v, 0.0) / alpha) - 1.0)
        return jnp.where(v > 0.0, v, neg)

    x = x_ref[...]                                               # (B*A, D_pad)
    h = celu(jnp.dot(x, w0_ref[...], preferred_element_type=jnp.float32) + b0_ref[...])
    h = celu(jnp.dot(h, w1_ref[...], preferred_element_type=jnp.float32) + b1_ref[...])
    h = celu(jnp.dot(h, w2_ref[...], preferred_element_type=jnp.float32) + b2_ref[...])
    y = jnp.dot(h, w3_ref[...], preferred_element_type=jnp.float32) + b3_ref[...]  # (B*A, C)

    # Per-molecule reduction over atoms, done on the MXU with a 0/1 segment
    # matrix (out[b, c] = sum_a y[b*A + a, c]).  Avoids an in-kernel reshape
    # that would split the sublane dim.
    B, C = out_ref.shape
    rows = y.shape[0]
    A = rows // B
    r_ids = jax.lax.broadcasted_iota(jnp.int32, (B, rows), 1)
    b_ids = jax.lax.broadcasted_iota(jnp.int32, (B, rows), 0)
    lo = b_ids * A
    seg = ((r_ids >= lo) & (r_ids < lo + A)).astype(jnp.float32)  # (B, B*A)
    out_ref[...] = jnp.dot(seg, y, preferred_element_type=jnp.float32)


def _round_up(v, m):
    return ((v + m - 1) // m) * m


def _choose_block(n_mol, n_atoms, d_pad, target_rows=512, x_block_budget_bytes=4 << 20):
    """Molecules per grid step.  Multiple of 8 (sublane-aligned output block);
    aims for >= target_rows MXU rows while keeping the double-buffered x block
    within a conservative VMEM budget (fits v5e's 16 MiB scoped default and
    v7x's 64 MiB physical VMEM with headroom)."""
    b = max(1, (target_rows + n_atoms - 1) // n_atoms)
    max_b = max(1, x_block_budget_bytes // (n_atoms * d_pad * 4))
    b = min(b, max_b, max(n_mol, 1))
    return max(8, _round_up(b, 8))


def mlp_molecule_sum(x, params):
    """x: (N, A, D) float32 per-atom features. Returns (N, C) molecule energies."""
    N, A, D = x.shape
    (w0, b0), (w1, b1), (w2, b2), (w3, b3) = params
    C = w3.shape[1]

    # Pad the feature dim to a multiple of 128 lanes; pad W0 rows with zeros.
    D_pad = _round_up(D, 128)
    if D_pad != D:
        x = jnp.pad(x, ((0, 0), (0, 0), (0, D_pad - D)))
        w0 = jnp.pad(w0, ((0, D_pad - D), (0, 0)))

    # Batch B molecules per grid step; pad N so the grid divides evenly.
    B = _choose_block(N, A, D_pad)
    N_pad = _round_up(N, B)
    if N_pad != N:
        x = jnp.pad(x, ((0, N_pad - N), (0, 0), (0, 0)))

    x2d = x.reshape(N_pad * A, D_pad)
    rows = B * A

    out = pl.pallas_call(
        _mlp_mol_kernel,
        out_shape=jax.ShapeDtypeStruct((N_pad, C), jnp.float32),
        grid_spec=pltpu.PrefetchScalarGridSpec(
            num_scalar_prefetch=0,
            grid=(N_pad // B,),
            in_specs=[
                pl.BlockSpec((rows, D_pad), lambda i: (i, 0)),
                pl.BlockSpec(w0.shape, lambda i: (0, 0)),
                pl.BlockSpec(b0.shape, lambda i: (0, 0)),
                pl.BlockSpec(w1.shape, lambda i: (0, 0)),
                pl.BlockSpec(b1.shape, lambda i: (0, 0)),
                pl.BlockSpec(w2.shape, lambda i: (0, 0)),
                pl.BlockSpec(b2.shape, lambda i: (0, 0)),
                pl.BlockSpec(w3.shape, lambda i: (0, 0)),
                pl.BlockSpec(b3.shape, lambda i: (0, 0)),
            ],
            out_specs=pl.BlockSpec((B, C), lambda i: (i, 0)),
        ),
        compiler_params=pltpu.CompilerParams(
            dimension_semantics=("parallel",),
            vmem_limit_bytes=48 * 1024 * 1024,
        ),
    )(x2d, w0, b0, w1, b1, w2, b2, w3, b3)
    return out[:N]


def _mlp_molecule_sum_ref(x, params):
    """Plain-JAX reference of the Pallas kernel (for a sanity check)."""
    (w0, b0), (w1, b1), (w2, b2), (w3, b3) = params
    alpha = 0.1
    hp = jax.lax.Precision.HIGHEST

    def celu(v):
        return jnp.where(v > 0.0, v,
                         alpha * (jnp.exp(jnp.minimum(v, 0.0) / alpha) - 1.0))

    h = celu(jnp.dot(x, w0, precision=hp) + b0)
    h = celu(jnp.dot(h, w1, precision=hp) + b1)
    h = celu(jnp.dot(h, w2, precision=hp) + b2)
    y = jnp.dot(h, w3, precision=hp) + b3
    return jnp.sum(y, axis=1)


# ----------------------------------------------------------------------------
# ANI AEV computer (plain JAX glue; follows torchani AEVComputer semantics)
# ----------------------------------------------------------------------------
def _cutoff_cosine(d, rc):
    return jnp.where(d <= rc, 0.5 * jnp.cos(jnp.pi * d / rc) + 0.5, 0.0)


def aev_consts():
    Rcr, EtaR = 5.2, 16.0
    ShfR = jnp.linspace(0.9, Rcr - (Rcr - 0.9) / 16, 16).astype(jnp.float32)
    Rca, EtaA, Zeta = 3.5, 8.0, 32.0
    ShfA = jnp.linspace(0.9, Rca - (Rca - 0.9) / 4, 4).astype(jnp.float32)
    ShfZ = jnp.linspace(np.pi / 8 / 2, np.pi - np.pi / 8 / 2, 8).astype(jnp.float32)
    return Rcr, EtaR, ShfR, Rca, EtaA, Zeta, ShfA, ShfZ


def aev_length(num_species):
    _, _, ShfR, _, _, _, ShfA, ShfZ = aev_consts()
    radial = num_species * ShfR.shape[0]
    angular = (num_species * (num_species + 1) // 2) * ShfA.shape[0] * ShfZ.shape[0]
    return radial + angular


def compute_aev(species, coords, num_species):
    Rcr, EtaR, ShfR, Rca, EtaA, Zeta, ShfA, ShfZ = aev_consts()
    N, A = species.shape
    # vec[n, i, j] = r_j - r_i
    vec = coords[:, None, :, :] - coords[:, :, None, :]          # (N, A, A, 3)
    d2 = jnp.sum(vec * vec, axis=-1)                             # (N, A, A)
    # safe sqrt: forward-identical, avoids NaN grads on the zero diagonal
    d = jnp.where(d2 > 0.0, jnp.sqrt(jnp.where(d2 > 0.0, d2, 1.0)), 0.0)
    not_self = ~jnp.eye(A, dtype=bool)[None]                     # (1, A, A)

    # ---- radial AEV ----
    fc_r = _cutoff_cosine(d, Rcr)
    rterm = 0.25 * jnp.exp(-EtaR * (d[..., None] - ShfR) ** 2) * fc_r[..., None]
    rterm = rterm * not_self[..., None]                          # (N, A, A, 16)
    oh = jax.nn.one_hot(species, num_species, dtype=coords.dtype)  # (N, A, S)
    radial = jnp.einsum('njs,nijr->nisr', oh, rterm)
    radial = radial.reshape(N, A, num_species * ShfR.shape[0])

    # ---- angular AEV ----
    d_ij = d[:, :, :, None]                                      # (N, A, A, 1)
    d_ik = d[:, :, None, :]                                      # (N, A, 1, A)
    dot_jk = jnp.einsum('nijc,nikc->nijk', vec, vec)             # (N, A, A, A)
    cos_angles = dot_jk / jnp.maximum(d_ij * d_ik, 1e-10)
    angles = jnp.arccos(0.95 * cos_angles)
    fc_a = _cutoff_cosine(d, Rca)
    fc_prod = fc_a[:, :, :, None] * fc_a[:, :, None, :]
    # factor1: over ShfZ ; factor2: over ShfA
    f1 = ((1.0 + jnp.cos(angles[..., None, None] - ShfZ[None, :])) / 2.0) ** Zeta
    f2 = jnp.exp(-EtaA * ((d_ij + d_ik)[..., None, None] / 2.0 - ShfA[:, None]) ** 2)
    aterm = 2.0 * f1 * f2 * fc_prod[..., None, None]             # (N,A,A,A,4,8)
    nsa, nsz = ShfA.shape[0], ShfZ.shape[0]
    aterm = aterm.reshape(N, A, A, A, nsa * nsz)
    idx = jnp.arange(A)
    pair_mask = (idx[:, None] < idx[None, :])[None, None]                           # j < k
    pair_mask = pair_mask & (idx[None, :, None, None] != idx[None, None, :, None])  # i != j
    pair_mask = pair_mask & (idx[None, :, None, None] != idx[None, None, None, :])  # i != k
    aterm = aterm * pair_mask[..., None]

    # species-pair index (torchani triu ordering)
    triu = np.zeros((num_species, num_species), dtype=np.int32)
    s1, s2 = np.triu_indices(num_species)
    pidx = np.arange(len(s1), dtype=np.int32)
    triu[s1, s2] = pidx
    triu[s2, s1] = pidx
    num_pairs = len(s1)
    pair_index = jnp.asarray(triu)[species[:, :, None], species[:, None, :]]    # (N, A, A)
    pair_oh = jax.nn.one_hot(pair_index, num_pairs, dtype=coords.dtype)         # (N, A, A, P)
    angular = jnp.einsum('nijka,njkp->nipa', aterm, pair_oh)
    angular = angular.reshape(N, A, num_pairs * nsa * nsz)

    return jnp.concatenate([radial, angular], axis=-1)


# ----------------------------------------------------------------------------
# ANINNP / ExmodNNP forward
# ----------------------------------------------------------------------------
NUM_ELEMENTS = 4  # ['H', 'C', 'N', 'O']


def aninnp_forward(mlp_params, species, coords, num_species, approx=None):
    aev = compute_aev(species, coords, num_species)              # (N, A, aev_dim)
    if approx is not None:
        aev = jnp.concatenate([aev, approx.astype(aev.dtype)], axis=-1)
    return mlp_molecule_sum(aev.astype(jnp.float32), mlp_params)  # (N, C)


def exmod_forward(monomer_params, interaction_params, species, coordinates,
                  belongings, approx):
    # Monomer split mirrors torch.masked_select + view (static host-side split).
    # NOTE: uses np.asarray -> not jit-traceable; fine for this eager forward.
    b_np = np.asarray(belongings)
    sp_np = np.asarray(species)
    co_np = np.asarray(coordinates)
    m1 = b_np == 1
    m2 = b_np == 2
    natom1 = int(m1[0].sum())
    natom2 = int(m2[0].sum())
    species1 = jnp.asarray(sp_np[m1].reshape(-1, natom1))
    species2 = jnp.asarray(sp_np[m2].reshape(-1, natom2))
    coord1 = jnp.asarray(co_np[np.broadcast_to(m1[..., None], co_np.shape)].reshape(-1, natom1, 3))
    coord2 = jnp.asarray(co_np[np.broadcast_to(m2[..., None], co_np.shape)].reshape(-1, natom2, 3))

    N = species.shape[0]
    if natom1 == natom2:
        # Fuse the two monomer passes (shared params) into one AEV + one kernel call.
        species12 = jnp.concatenate([species1, species2], axis=0)
        coord12 = jnp.concatenate([coord1, coord2], axis=0)
        mono12 = aninnp_forward(monomer_params, species12, coord12, NUM_ELEMENTS)     # (2N, 3)
        monomer1, monomer2 = mono12[:N], mono12[N:]
    else:
        monomer1 = aninnp_forward(monomer_params, species1, coord1, NUM_ELEMENTS)     # (N, 3)
        monomer2 = aninnp_forward(monomer_params, species2, coord2, NUM_ELEMENTS)     # (N, 3)

    # Interaction model: dimer AEV with belonging-shifted species (num_species*2 bins)
    species_wb = species + (belongings - 1) * NUM_ELEMENTS
    interaction = aninnp_forward(interaction_params, species_wb, coordinates,
                                 2 * NUM_ELEMENTS, approx=approx)                     # (N, 5)

    e_1e1 = monomer1[:, 0] + interaction[:, 0]
    e_1p2m = monomer1[:, 1] + monomer2[:, 2] + interaction[:, 1]
    v_1e12e1 = interaction[:, 2]
    v_1e11p2m = interaction[:, 3]
    v_1e11m2p = interaction[:, 4]
    return jnp.stack([e_1e1, e_1p2m, v_1e12e1, v_1e11p2m, v_1e11m2p], axis=-1)        # (N, 5)


def init_mlp_params(key, dims):
    """Xavier-normal weights (stored as (in, out)), zero biases (stored as (1, out))."""
    params = []
    for i in range(len(dims) - 1):
        key, sub = jax.random.split(key)
        fan_in, fan_out = dims[i], dims[i + 1]
        std = float(np.sqrt(2.0 / (fan_in + fan_out)))
        w = (std * jax.random.normal(sub, (fan_in, fan_out))).astype(jnp.float32)
        b = jnp.zeros((1, fan_out), dtype=jnp.float32)
        params.append((w, b))
    return params


if __name__ == "__main__":
    key = jax.random.PRNGKey(0)

    # Small dimer system: 2 molecules, each a dimer of two 3-atom fragments (6 atoms total).
    N, A = 2, 6
    # elements ['H','C','N','O'] -> H=0, O=3 ; each fragment is O,H,H (water-like)
    species = jnp.array([[3, 0, 0, 3, 0, 0]] * N, dtype=jnp.int32)        # (2, 6)
    belongings = jnp.array([[1, 1, 1, 2, 2, 2]] * N, dtype=jnp.int32)     # (2, 6)
    key, kc, ka, km, ki, kt = jax.random.split(key, 6)
    coordinates = 1.5 * jax.random.normal(kc, (N, A, 3), dtype=jnp.float32)
    approx = jax.random.normal(ka, (N, A, 4), dtype=jnp.float32)          # interaction approx_channels=4

    # Monomer model: AEV over 4 species, approx_channels=0, outputs 3 properties.
    mono_in = aev_length(NUM_ELEMENTS) + 0          # 384
    monomer_params = init_mlp_params(km, [mono_in, 64, 32, 16, 3])
    # Interaction model: dimer AEV over 8 species bins, approx_channels=4, outputs 5.
    inter_in = aev_length(2 * NUM_ELEMENTS) + 4     # 1284 (kernel pads to 1408)
    interaction_params = init_mlp_params(ki, [inter_in, 64, 32, 16, 5])

    # Sanity check: Pallas MLP + per-molecule reduce vs plain-JAX reference.
    xt = jax.random.normal(kt, (3, A, mono_in), dtype=jnp.float32)
    ref = _mlp_molecule_sum_ref(xt, monomer_params)
    got = mlp_molecule_sum(xt, monomer_params)
    jax.block_until_ready(got)
    assert got.shape == ref.shape, (got.shape, ref.shape)
    assert bool(jnp.allclose(ref, got, rtol=5e-2, atol=5e-2)), "Pallas MLP mismatch"

    out = exmod_forward(monomer_params, interaction_params,
                        species, coordinates, belongings, approx)
    jax.block_until_ready(out)
    assert out.shape == (N, 5), out.shape
    assert bool(jnp.all(jnp.isfinite(out)))
    print("KERNEL_OK")
</pallas_src>

<mosaic_0001>
module attributes {stable_mosaic.version = 11 : i64} {
  func.func @_mlp_mol_kernel(%arg0: i32, %arg1: memref<48x384xf32, #tpu.memory_space<vmem>>, %arg2: memref<384x64xf32, #tpu.memory_space<vmem>>, %arg3: memref<1x64xf32, #tpu.memory_space<vmem>>, %arg4: memref<64x32xf32, #tpu.memory_space<vmem>>, %arg5: memref<1x32xf32, #tpu.memory_space<vmem>>, %arg6: memref<32x16xf32, #tpu.memory_space<vmem>>, %arg7: memref<1x16xf32, #tpu.memory_space<vmem>>, %arg8: memref<16x3xf32, #tpu.memory_space<vmem>>, %arg9: memref<1x3xf32, #tpu.memory_space<vmem>>, %arg10: memref<8x3xf32, #tpu.memory_space<vmem>>) attributes {dimension_semantics = [#tpu.dimension_semantics<parallel>], iteration_bounds = array<i64: 1>, scalar_prefetch = 0 : i64, scratch_operands = 0 : i64, tpu.core_type = #tpu.core_type<tc>, window_params = [{transform_indices = @transform_0, window_bounds = array<i64: 48, 384>}, {pipeline_mode = #tpu.pipeline_mode<synchronous>, transform_indices = @transform_1, window_bounds = array<i64: 384, 64>}, {pipeline_mode = #tpu.pipeline_mode<synchronous>, transform_indices = @transform_2, window_bounds = array<i64: 1, 64>}, {pipeline_mode = #tpu.pipeline_mode<synchronous>, transform_indices = @transform_3, window_bounds = array<i64: 64, 32>}, {pipeline_mode = #tpu.pipeline_mode<synchronous>, transform_indices = @transform_4, window_bounds = array<i64: 1, 32>}, {pipeline_mode = #tpu.pipeline_mode<synchronous>, transform_indices = @transform_5, window_bounds = array<i64: 32, 16>}, {pipeline_mode = #tpu.pipeline_mode<synchronous>, transform_indices = @transform_6, window_bounds = array<i64: 1, 16>}, {pipeline_mode = #tpu.pipeline_mode<synchronous>, transform_indices = @transform_7, window_bounds = array<i64: 16, 3>}, {pipeline_mode = #tpu.pipeline_mode<synchronous>, transform_indices = @transform_8, window_bounds = array<i64: 1, 3>}, {transform_indices = @transform_9, window_bounds = array<i64: 8, 3>}]} {
    %c0 = arith.constant 0 : index
    %c0_0 = arith.constant 0 : index
    %0 = vector.load %arg1[%c0, %c0_0] : memref<48x384xf32, #tpu.memory_space<vmem>>, vector<48x384xf32>
    %c0_1 = arith.constant 0 : index
    %c0_2 = arith.constant 0 : index
    %1 = vector.load %arg2[%c0_1, %c0_2] : memref<384x64xf32, #tpu.memory_space<vmem>>, vector<384x64xf32>
    %cst = arith.constant dense<0.000000e+00> : vector<48x64xf32>
    %2 = tpu.matmul %0, %1, %cst {dimension_numbers = #tpu.dot_dimension_numbers<[1], [0], [0], [1], [0, 0, 1, 1], [], []>} : vector<48x384xf32>, vector<384x64xf32>, vector<48x64xf32> -> vector<48x64xf32>
    %c0_3 = arith.constant 0 : index
    %c0_4 = arith.constant 0 : index
    %3 = vector.load %arg3[%c0_3, %c0_4] : memref<1x64xf32, #tpu.memory_space<vmem>>, vector<1x64xf32>
    %4 = vector.broadcast %3 : vector<1x64xf32> to vector<48x64xf32>
    %5 = arith.addf %2, %4 : vector<48x64xf32>
    %cst_5 = arith.constant 0.000000e+00 : f32
    %6 = vector.broadcast %cst_5 : f32 to vector<48x64xf32>
    %7 = arith.minimumf %5, %6 : vector<48x64xf32>
    %cst_6 = arith.constant 1.000000e-01 : f32
    %8 = vector.broadcast %cst_6 : f32 to vector<48x64xf32>
    %9 = arith.divf %7, %8 : vector<48x64xf32>
    %10 = math.exp %9 : vector<48x64xf32>
    %cst_7 = arith.constant 1.000000e+00 : f32
    %11 = vector.broadcast %cst_7 : f32 to vector<48x64xf32>
    %12 = arith.subf %10, %11 : vector<48x64xf32>
    %cst_8 = arith.constant 1.000000e-01 : f32
    %13 = vector.broadcast %cst_8 : f32 to vector<48x64xf32>
    %14 = arith.mulf %13, %12 : vector<48x64xf32>
    %cst_9 = arith.constant 0.000000e+00 : f32
    %15 = vector.broadcast %cst_9 : f32 to vector<48x64xf32>
    %16 = arith.cmpf ogt, %5, %15 : vector<48x64xf32>
    %17 = arith.select %16, %5, %14 : vector<48x64xi1>, vector<48x64xf32>
    %c0_10 = arith.constant 0 : index
    %c0_11 = arith.constant 0 : index
    %18 = vector.load %arg4[%c0_10, %c0_11] : memref<64x32xf32, #tpu.memory_space<vmem>>, vector<64x32xf32>
    %cst_12 = arith.constant dense<0.000000e+00> : vector<48x32xf32>
    %19 = tpu.matmul %17, %18, %cst_12 {dimension_numbers = #tpu.dot_dimension_numbers<[1], [0], [0], [1], [0, 0, 1, 1], [], []>} : vector<48x64xf32>, vector<64x32xf32>, vector<48x32xf32> -> vector<48x32xf32>
    %c0_13 = arith.constant 0 : index
    %c0_14 = arith.constant 0 : index
    %20 = vector.load %arg5[%c0_13, %c0_14] : memref<1x32xf32, #tpu.memory_space<vmem>>, vector<1x32xf32>
    %21 = vector.broadcast %20 : vector<1x32xf32> to vector<48x32xf32>
    %22 = arith.addf %19, %21 : vector<48x32xf32>
    %cst_15 = arith.constant 0.000000e+00 : f32
    %23 = vector.broadcast %cst_15 : f32 to vector<48x32xf32>
    %24 = arith.minimumf %22, %23 : vector<48x32xf32>
    %cst_16 = arith.constant 1.000000e-01 : f32
    %25 = vector.broadcast %cst_16 : f32 to vector<48x32xf32>
    %26 = arith.divf %24, %25 : vector<48x32xf32>
    %27 = math.exp %26 : vector<48x32xf32>
    %cst_17 = arith.constant 1.000000e+00 : f32
    %28 = vector.broadcast %cst_17 : f32 to vector<48x32xf32>
    %29 = arith.subf %27, %28 : vector<48x32xf32>
    %cst_18 = arith.constant 1.000000e-01 : f32
    %30 = vector.broadcast %cst_18 : f32 to vector<48x32xf32>
    %31 = arith.mulf %30, %29 : vector<48x32xf32>
    %cst_19 = arith.constant 0.000000e+00 : f32
    %32 = vector.broadcast %cst_19 : f32 to vector<48x32xf32>
    %33 = arith.cmpf ogt, %22, %32 : vector<48x32xf32>
    %34 = arith.select %33, %22, %31 : vector<48x32xi1>, vector<48x32xf32>
    %c0_20 = arith.constant 0 : index
    %c0_21 = arith.constant 0 : index
    %35 = vector.load %arg6[%c0_20, %c0_21] : memref<32x16xf32, #tpu.memory_space<vmem>>, vector<32x16xf32>
    %cst_22 = arith.constant dense<0.000000e+00> : vector<48x16xf32>
    %36 = tpu.matmul %34, %35, %cst_22 {dimension_numbers = #tpu.dot_dimension_numbers<[1], [0], [0], [1], [0, 0, 1, 1], [], []>} : vector<48x32xf32>, vector<32x16xf32>, vector<48x16xf32> -> vector<48x16xf32>
    %c0_23 = arith.constant 0 : index
    %c0_24 = arith.constant 0 : index
    %37 = vector.load %arg7[%c0_23, %c0_24] : memref<1x16xf32, #tpu.memory_space<vmem>>, vector<1x16xf32>
    %38 = vector.broadcast %37 : vector<1x16xf32> to vector<48x16xf32>
    %39 = arith.addf %36, %38 : vector<48x16xf32>
    %cst_25 = arith.constant 0.000000e+00 : f32
    %40 = vector.broadcast %cst_25 : f32 to vector<48x16xf32>
    %41 = arith.minimumf %39, %40 : vector<48x16xf32>
    %cst_26 = arith.constant 1.000000e-01 : f32
    %42 = vector.broadcast %cst_26 : f32 to vector<48x16xf32>
    %43 = arith.divf %41, %42 : vector<48x16xf32>
    %44 = math.exp %43 : vector<48x16xf32>
    %cst_27 = arith.constant 1.000000e+00 : f32
    %45 = vector.broadcast %cst_27 : f32 to vector<48x16xf32>
    %46 = arith.subf %44, %45 : vector<48x16xf32>
    %cst_28 = arith.constant 1.000000e-01 : f32
    %47 = vector.broadcast %cst_28 : f32 to vector<48x16xf32>
    %48 = arith.mulf %47, %46 : vector<48x16xf32>
    %cst_29 = arith.constant 0.000000e+00 : f32
    %49 = vector.broadcast %cst_29 : f32 to vector<48x16xf32>
    %50 = arith.cmpf ogt, %39, %49 : vector<48x16xf32>
    %51 = arith.select %50, %39, %48 : vector<48x16xi1>, vector<48x16xf32>
    %c0_30 = arith.constant 0 : index
    %c0_31 = arith.constant 0 : index
    %52 = vector.load %arg8[%c0_30, %c0_31] : memref<16x3xf32, #tpu.memory_space<vmem>>, vector<16x3xf32>
    %cst_32 = arith.constant dense<0.000000e+00> : vector<48x3xf32>
    %53 = tpu.matmul %51, %52, %cst_32 {dimension_numbers = #tpu.dot_dimension_numbers<[1], [0], [0], [1], [0, 0, 1, 1], [], []>} : vector<48x16xf32>, vector<16x3xf32>, vector<48x3xf32> -> vector<48x3xf32>
    %c0_33 = arith.constant 0 : index
    %c0_34 = arith.constant 0 : index
    %54 = vector.load %arg9[%c0_33, %c0_34] : memref<1x3xf32, #tpu.memory_space<vmem>>, vector<1x3xf32>
    %55 = vector.broadcast %54 : vector<1x3xf32> to vector<48x3xf32>
    %56 = arith.addf %53, %55 : vector<48x3xf32>
    %57 = tpu.iota {dimensions = array<i32: 1>} : vector<8x48xi32>
    %58 = tpu.iota {dimensions = array<i32: 0>} : vector<8x48xi32>
    %c6_i32 = arith.constant 6 : i32
    %59 = vector.broadcast %c6_i32 : i32 to vector<8x48xi32>
    %60 = arith.muli %58, %59 : vector<8x48xi32>
    %61 = arith.cmpi sge, %57, %60 : vector<8x48xi32>
    %c6_i32_35 = arith.constant 6 : i32
    %62 = vector.broadcast %c6_i32_35 : i32 to vector<8x48xi32>
    %63 = arith.addi %60, %62 : vector<8x48xi32>
    %64 = arith.cmpi slt, %57, %63 : vector<8x48xi32>
    %65 = arith.andi %61, %64 : vector<8x48xi1>
    %66 = arith.extui %65 : vector<8x48xi1> to vector<8x48xi32>
    %67 = arith.sitofp %66 : vector<8x48xi32> to vector<8x48xf32>
    %cst_36 = arith.constant dense<0.000000e+00> : vector<8x3xf32>
    %68 = tpu.matmul %67, %56, %cst_36 {dimension_numbers = #tpu.dot_dimension_numbers<[1], [0], [0], [1], [0, 0, 1, 1], [], []>} : vector<8x48xf32>, vector<48x3xf32>, vector<8x3xf32> -> vector<8x3xf32>
    %c0_37 = arith.constant 0 : index
    %c0_38 = arith.constant 0 : index
    %69 = vector.load %arg10[%c0_37, %c0_38] : memref<8x3xf32, #tpu.memory_space<vmem>>, vector<8x3xf32>
    tpu.vector_store %arg10[%c0_37, %c0_38], %68 {strides = array<i32>} : memref<8x3xf32, #tpu.memory_space<vmem>>, vector<8x3xf32>,
    return
  }
  func.func @transform_0(%arg0: i32) -> (i32, i32) {
    %c0_i32 = arith.constant 0 : i32
    %c0_i32_0 = arith.constant 0 : i32
    return %arg0, %c0_i32 : i32, i32
  }
  func.func @transform_1(%arg0: i32) -> (i32, i32) {
    %c0_i32 = arith.constant 0 : i32
    %c0_i32_0 = arith.constant 0 : i32
    %c0_i32_1 = arith.constant 0 : i32
    return %c0_i32, %c0_i32_0 : i32, i32
  }
  func.func @transform_2(%arg0: i32) -> (i32, i32) {
    %c0_i32 = arith.constant 0 : i32
    %c0_i32_0 = arith.constant 0 : i32
    %c0_i32_1 = arith.constant 0 : i32
    return %c0_i32, %c0_i32_0 : i32, i32
  }
  func.func @transform_3(%arg0: i32) -> (i32, i32) {
    %c0_i32 = arith.constant 0 : i32
    %c0_i32_0 = arith.constant 0 : i32
    %c0_i32_1 = arith.constant 0 : i32
    return %c0_i32, %c0_i32_0 : i32, i32
  }
  func.func @transform_4(%arg0: i32) -> (i32, i32) {
    %c0_i32 = arith.constant 0 : i32
    %c0_i32_0 = arith.constant 0 : i32
    %c0_i32_1 = arith.constant 0 : i32
    return %c0_i32, %c0_i32_0 : i32, i32
  }
  func.func @transform_5(%arg0: i32) -> (i32, i32) {
    %c0_i32 = arith.constant 0 : i32
    %c0_i32_0 = arith.constant 0 : i32
    %c0_i32_1 = arith.constant 0 : i32
    return %c0_i32, %c0_i32_0 : i32, i32
  }
  func.func @transform_6(%arg0: i32) -> (i32, i32) {
    %c0_i32 = arith.constant 0 : i32
    %c0_i32_0 = arith.constant 0 : i32
    %c0_i32_1 = arith.constant 0 : i32
    return %c0_i32, %c0_i32_0 : i32, i32
  }
  func.func @transform_7(%arg0: i32) -> (i32, i32) {
    %c0_i32 = arith.constant 0 : i32
    %c0_i32_0 = arith.constant 0 : i32
    %c0_i32_1 = arith.constant 0 : i32
    return %c0_i32, %c0_i32_0 : i32, i32
  }
  func.func @transform_8(%arg0: i32) -> (i32, i32) {
    %c0_i32 = arith.constant 0 : i32
    %c0_i32_0 = arith.constant 0 : i32
    %c0_i32_1 = arith.constant 0 : i32
    return %c0_i32, %c0_i32_0 : i32, i32
  }
  func.func @transform_9(%arg0: i32) -> (i32, i32) {
    %c0_i32 = arith.constant 0 : i32
    %c0_i32_0 = arith.constant 0 : i32
    return %arg0, %c0_i32 : i32, i32
  }
}

</mosaic_0001>

<bundles_post_ra>
// kernel: tpu_custom_call.1
= control target key start
LH: loop header
LB: loop body
LE: loop exit
PB: predicated region body
PF: predicated region fallthrough
CT: control target
= control target key end

     0   :  { %vm274_vm1 = vcmask 523264   ;;  %vm384_vm8 = vcmask 261120   ;;  %vm492_vm15 = vcmask 130048   ;;  %s1024_s1 = inlined_call_operand.vmem [shape: f32[384,64], index: 1, kind: input, shape index: {}]   ;;  %s1025_s2 = inlined_call_operand.vmem [shape: f32[1,64], index: 2, kind: input, shape index: {}]   ;;  %s1026_s0 = inlined_call_operand.vmem [shape: f32[48,384], index: 0, kind: input, shape index: {}]   ;;  %s1027_s4 = inlined_call_operand.vmem [shape: f32[1,32], index: 4, kind: input, shape index: {}]   ;;  %s1028_s3 = inlined_call_operand.vmem [shape: f32[64,32], index: 3, kind: input, shape index: {}]   ;;  %s1029_s6 = inlined_call_operand.vmem [shape: f32[1,16], index: 6, kind: input, shape index: {}]   ;;  %s1030_s5 = inlined_call_operand.vmem [shape: f32[32,16], index: 5, kind: input, shape index: {}]   ;;  %s1031_s8 = inlined_call_operand.vmem [shape: f32[1,3], index: 8, kind: input, shape index: {}]   ;;  %s1032_s7 = inlined_call_operand.vmem [shape: f32[16,3], index: 7, kind: input, shape index: {}]   ;;  %s1033_s9 = inlined_call_operand.vmem [shape: f32[8,3], index: 9, kind: output, shape index: {}]  }
   0x1   :  { %v97_v0 = vld [vmem:[%s1024_s1 + $0x178] sm:$0xff]  ;;  %v96_v2 = vld [vmem:[%s1024_s1 + $0x170] sm:$0xff]  ;;  %v95_v5 = vld [vmem:[%s1024_s1 + $0x168] sm:$0xff] }
   0x2   :  { %v65_v1 = vld [vmem:[%s1024_s1 + $0x78] sm:$0xff]  ;;  %172 = vmatpush.msra.mxu2 %v97_v0  ;;  %v64_v3 = vld [vmem:[%s1024_s1 + $0x70] sm:$0xff]  ;;  %v63_v6 = vld [vmem:[%s1024_s1 + $0x68] sm:$0xff] }
   0x3   :  { %102 = vmatpush.msra.mxu0 %v65_v1  ;;  %v81_v4 = vld [vmem:[%s1024_s1 + $0xf8] sm:$0xff]  ;;  %v80_v7 = vld [vmem:[%s1024_s1 + $0xf0] sm:$0xff]  ;;  %v79_v8 = vld [vmem:[%s1024_s1 + $0xe8] sm:$0xff] }
   0x4   :  { %137 = vmatpush.msra.mxu1 %v81_v4  ;;  %173 = vmatpush.msra.mxu2 %v96_v2  ;;  %v94_v9 = vld [vmem:[%s1024_s1 + $0x160] sm:$0xff]  ;;  %v93_v12 = vld [vmem:[%s1024_s1 + $0x158] sm:$0xff]  ;;  %v92_v15 = vld [vmem:[%s1024_s1 + $0x150] sm:$0xff]  ;;  %v671_v4 = vmov 0.1  }
   0x5   :  { %103 = vmatpush.msra.mxu0 %v64_v3  ;;  %v62_v10 = vld [vmem:[%s1024_s1 + $0x60] sm:$0xff]  ;;  %v61_v13 = vld [vmem:[%s1024_s1 + $0x58] sm:$0xff]  ;;  %v60_v16 = vld [vmem:[%s1024_s1 + $0x50] sm:$0xff]  ;;  %633 = vrcp.f32 %v671_v4 }
   0x6   :  { %138 = vmatpush.msra.mxu1 %v80_v7  ;;  %174 = vmatpush.msra.mxu2 %v95_v5  ;;  %v78_v11 = vld [vmem:[%s1024_s1 + $0xe0] sm:$0xff]  ;;  %v77_v14 = vld [vmem:[%s1024_s1 + $0xd8] sm:$0xff]  ;;  %v76_v17 = vld [vmem:[%s1024_s1 + $0xd0] sm:$0xff] }
   0x7   :  { %104 = vmatpush.msra.mxu0 %v63_v6  ;;  %v91_v18 = vld [vmem:[%s1024_s1 + $0x148] sm:$0xff]  ;;  %v90_v21 = vld [vmem:[%s1024_s1 + $0x140] sm:$0xff]  ;;  %v89_v24 = vld [vmem:[%s1024_s1 + $0x138] sm:$0xff] }
   0x8   :  { %139 = vmatpush.msra.mxu1 %v79_v8  ;;  %175 = vmatpush.msra.mxu2 %v94_v9  ;;  %v59_v19 = vld [vmem:[%s1024_s1 + $0x48] sm:$0xff]  ;;  %v58_v22 = vld [vmem:[%s1024_s1 + $0x40] sm:$0xff]  ;;  %v57_v25 = vld [vmem:[%s1024_s1 + $0x38] sm:$0xff] }
   0x9   :  { %105 = vmatpush.msra.mxu0 %v62_v10  ;;  %v75_v20 = vld [vmem:[%s1024_s1 + $0xc8] sm:$0xff]  ;;  %v74_v23 = vld [vmem:[%s1024_s1 + $0xc0] sm:$0xff]  ;;  %v73_v26 = vld [vmem:[%s1024_s1 + $0xb8] sm:$0xff] }
   0xa   :  { %140 = vmatpush.msra.mxu1 %v78_v11  ;;  %176 = vmatpush.msra.mxu2 %v93_v12  ;;  %v88_v27 = vld [vmem:[%s1024_s1 + $0x130] sm:$0xff]  ;;  %v87_v30 = vld [vmem:[%s1024_s1 + $0x128] sm:$0xff]  ;;  %v86_v33 = vld [vmem:[%s1024_s1 + $0x120] sm:$0xff] }
   0xb   :  { %106 = vmatpush.msra.mxu0 %v61_v13  ;;  %v56_v28 = vld [vmem:[%s1024_s1 + $0x30] sm:$0xff]  ;;  %v55_v31 = vld [vmem:[%s1024_s1 + $0x28] sm:$0xff]  ;;  %v54_v34 = vld [vmem:[%s1024_s1 + $0x20] sm:$0xff]  ;;  %v634_v8 = vpop.eup %633 }
   0xc   :  { %141 = vmatpush.msra.mxu1 %v77_v14  ;;  %177 = vmatpush.msra.mxu2 %v92_v15  ;;  %v72_v29 = vld [vmem:[%s1024_s1 + $0xb0] sm:$0xff]  ;;  %v71_v32 = vld [vmem:[%s1024_s1 + $0xa8] sm:$0xff]  ;;  %v70_v35 = vld [vmem:[%s1024_s1 + $0xa0] sm:$0xff]  ;;  %v214_v11 = vmul.f32 0.1, %v634_v8  ;;  %vm218_vm0 = vweird.f32 %v634_v8 }
   0xd   :  { %107 = vmatpush.msra.mxu0 %v60_v16  ;;  %v85_v36 = vld [vmem:[%s1024_s1 + $0x118] sm:$0xff]  ;;  %v84_v39 = vld [vmem:[%s1024_s1 + $0x110] sm:$0xff]  ;;  %v83_v42 = vld [vmem:[%s1024_s1 + $0x108] sm:$0xff] }
   0xe   :  { %142 = vmatpush.msra.mxu1 %v76_v17  ;;  %178 = vmatpush.msra.mxu2 %v91_v18  ;;  %v53_v37 = vld [vmem:[%s1024_s1 + $0x18] sm:$0xff]  ;;  %v52_v40 = vld [vmem:[%s1024_s1 + $0x10] sm:$0xff]  ;;  %v51_v43 = vld [vmem:[%s1024_s1 + $0x8] sm:$0xff]  ;;  %v215_v13 = vsub.f32 1.0, %v214_v11 }
   0xf   :  { %108 = vmatpush.msra.mxu0 %v59_v19  ;;  %v69_v38 = vld [vmem:[%s1024_s1 + $0x98] sm:$0xff]  ;;  %v68_v41 = vld [vmem:[%s1024_s1 + $0x90] sm:$0xff]  ;;  %v67_v44 = vld [vmem:[%s1024_s1 + $0x88] sm:$0xff] }
  0x10   :  { %143 = vmatpush.msra.mxu1 %v75_v20  ;;  %179 = vmatpush.msra.mxu2 %v90_v21  ;;  %v82_v45 = vld [vmem:[%s1024_s1 + $0x100] sm:$0xff]  ;;  %v34_v47 = vld [vmem:[%s1026_s0 + $0x10] sm:$0xff]  ;;  %v33_v50 = vld [vmem:[%s1026_s0 + $0x8] sm:$0xff]  ;;  %v216_v16 = vmul.f32 %v634_v8, %v215_v13 }
  0x11   :  { %109 = vmatpush.msra.mxu0 %v58_v22  ;;  %v50_v46 = vld [vmem:[%s1024_s1] sm:$0xff]  ;;  %v37_v51 = vld [vmem:[%s1026_s0 + $0x28] sm:$0xff]  ;;  %v35_v52 = vld [vmem:[%s1026_s0 + $0x18] sm:$0xff] }
  0x12   :  { %144 = vmatpush.msra.mxu1 %v74_v23  ;;  %180 = vmatpush.msra.mxu2 %v89_v24  ;;  %v32_v48 = vld [vmem:[%s1026_s0] sm:$0xff]  ;;  %v38_v55 = vld [vmem:[%s1026_s0 + $0x30] sm:$0xff]  ;;  %v39_v56 = vld [vmem:[%s1026_s0 + $0x38] sm:$0xff]  ;;  %v217_v20 = vadd.f32 %v634_v8, %v216_v16 }
  0x13   :  { %110 = vmatpush.msra.mxu0 %v57_v25  ;;  %v66_v49 = vld [vmem:[%s1024_s1 + $0x80] sm:$0xff]  ;;  %v43_v57 = vld [vmem:[%s1026_s0 + $0x58] sm:$0xff]  ;;  %v41_v58 = vld [vmem:[%s1026_s0 + $0x48] sm:$0xff] }
  0x14   :  { %145 = vmatpush.msra.mxu1 %v73_v26  ;;  %181 = vmatpush.msra.mxu2 %v88_v27  ;;  %v36_v53 = vld [vmem:[%s1026_s0 + $0x20] sm:$0xff]  ;;  %v42_v59 = vld [vmem:[%s1026_s0 + $0x50] sm:$0xff]  ;;  %v45_v62 = vld [vmem:[%s1026_s0 + $0x68] sm:$0xff]  ;;  %v951_v23 = vsel %vm218_vm0, %v634_v8, %v217_v20 }
  0x15   :  { %111 = vmatpush.msra.mxu0 %v56_v28  ;;  %v40_v54 = vld [vmem:[%s1026_s0 + $0x40] sm:$0xff]  ;;  %v46_v60 = vld [vmem:[%s1026_s0 + $0x70] sm:$0xff]  ;;  %v49_v63 = vld [vmem:[%s1026_s0 + $0x88] sm:$0xff] }
  0x16   :  { %146 = vmatpush.msra.mxu1 %v72_v29  ;;  %182 = vmatpush.msra.mxu2 %v87_v30  ;;  %v44_v61 = vld [vmem:[%s1026_s0 + $0x60] sm:$0xff]  ;;  %v47_v0 = vld [vmem:[%s1026_s0 + $0x78] sm:$0xff]  ;;  %v268_v3 = vld [vmem:[%s1028_s3 + $0x30] sm:$0xff] }
  0x17   :  { %112 = vmatpush.msra.mxu0 %v55_v31  ;;  %v48_v1 = vld [vmem:[%s1026_s0 + $0x80] sm:$0xff]  ;;  %v269_v2 = vld [vmem:[%s1028_s3 + $0x38] sm:$0xff]  ;;  %v267_v5 = vld [vmem:[%s1028_s3 + $0x28] sm:$0xff] }
  0x18   :  { %147 = vmatpush.msra.mxu1 %v71_v32  ;;  %183 = vmatpush.msra.mxu2 %v86_v33  ;;  %v266_v6 = vld [vmem:[%s1028_s3 + $0x20] sm:$0xff]  ;;  %v265_v7 = vld [vmem:[%s1028_s3 + $0x18] sm:$0xff]  ;;  %v264_v9 = vld [vmem:[%s1028_s3 + $0x10] sm:$0xff] }
  0x19   :  { %113 = vmatpush.msra.mxu0 %v54_v34  ;;  %301 = vmatpush.msra.mxu3 %v269_v2  ;;  %v263_v10 = vld [vmem:[%s1028_s3 + $0x8] sm:$0xff]  ;;  %v262_v12 = vld [vmem:[%s1028_s3] sm:$0xff] }
  0x1a   :  { %148 = vmatpush.msra.mxu1 %v70_v35  ;;  %184 = vmatpush.msra.mxu2 %v85_v36  ;;  %v948_v14 = vld [vmem:[%s1025_s2] ss:$0 sm:$0xff] }
  0x1b   :  { %114 = vmatpush.msra.mxu0 %v53_v37  ;;  %302 = vmatpush.msra.mxu3 %v268_v3 }
  0x1c   :  { %149 = vmatpush.msra.mxu1 %v69_v38  ;;  %185 = vmatpush.msra.mxu2 %v84_v39 }
  0x1d   :  { %115 = vmatpush.msra.mxu0 %v52_v40  ;;  %303 = vmatpush.msra.mxu3 %v267_v5 }
  0x1e   :  { %150 = vmatpush.msra.mxu1 %v68_v41  ;;  %186 = vmatpush.msra.mxu2 %v83_v42 }
  0x1f   :  { %116 = vmatpush.msra.mxu0 %v51_v43  ;;  %304 = vmatpush.msra.mxu3 %v266_v6 }
  0x20   :  { %151 = vmatpush.msra.mxu1 %v67_v44  ;;  %187 = vmatpush.msra.mxu2 %v82_v45 }
  0x21   :  { %117 = vmatpush.msra.mxu0 %v50_v46  ;;  %188 = vmatmul.f32.vlgmr.msra.gmra.mxu2 %v34_v47 }
  0x22   :  { %118 = vmatmul.f32.vlgmr.msra.gmra.mxu0 %v32_v48  ;;  %152 = vmatpush.msra.mxu1 %v66_v49 }
  0x23   :  { %153 = vmatmul.f32.vlgmr.msra.gmra.mxu1 %v33_v50  ;;  %305 = vmatpush.msra.mxu3 %v265_v7 }
  0x25   :  { %306 = vmatpush.msra.mxu3 %v264_v9 }
  0x27   :  { %307 = vmatpush.msra.mxu3 %v263_v10 }
  0x29   :  { %191 = vmatmul.f32.gmra.mxu2 %v37_v51  ;;  %308 = vmatpush.msra.mxu3 %v262_v12 }
  0x2a   :  { %121 = vmatmul.f32.gmra.mxu0 %v35_v52 }
  0x2b   :  { %156 = vmatmul.f32.gmra.mxu1 %v36_v53 }
  0x31   :  { %194 = vmatmul.f32.gmra.mxu2 %v40_v54 }
  0x32   :  { %124 = vmatmul.f32.gmra.mxu0 %v38_v55 }
  0x33   :  { %159 = vmatmul.f32.gmra.mxu1 %v39_v56 }
  0x39   :  { %197 = vmatmul.f32.gmra.mxu2 %v43_v57 }
  0x3a   :  { %127 = vmatmul.f32.gmra.mxu0 %v41_v58 }
  0x3b   :  { %162 = vmatmul.f32.gmra.mxu1 %v42_v59 }
  0x41   :  { %200 = vmatmul.f32.gmra.mxu2 %v46_v60 }
  0x42   :  { %130 = vmatmul.f32.gmra.mxu0 %v44_v61 }
  0x43   :  { %165 = vmatmul.f32.gmra.mxu1 %v45_v62 }
  0x49   :  { %203 = vmatmul.f32.gmra.mxu2 %v49_v63 }
  0x4a   :  { %133 = vmatmul.f32.gmra.mxu0 %v47_v0 }
  0x4b   :  { %168 = vmatmul.f32.gmra.mxu1 %v48_v1 }
  0x9f   :  { %v119_v15 = vpop.f32.mrf.mxu0 }
  0xa0   :  { %v120_v17 = vadd.f32 %v948_v14, %v119_v15  ;;  %v154_v18 = vpop.f32.mrf.mxu1 }
  0xa2   :  { %v155_v19 = vadd.f32 %v154_v18, %v120_v17 }
  0xa4   :  { %v189_v21 = vpop.f32.mrf.mxu2 }
  0xa5   :  { %v190_v22 = vadd.f32 %v189_v21, %v155_v19 }
  0xa7   :  { %v122_v24 = vpop.f32.mrf.mxu0  ;;  %v207_v25 = vmin.f32 %v190_v22, 0.0  ;;  %vm250_vm2 = vcmp.gt.f32.partialorder %v190_v22, 0.0 }
  0xa8   :  { %v123_v26 = vadd.f32 %v948_v14, %v122_v24  ;;  %v157_v27 = vpop.f32.mrf.mxu1 }
  0xa9   :  { %v220_v28 = vmul.f32 %v951_v23, %v207_v25 }
  0xaa   :  { %v158_v29 = vadd.f32 %v157_v27, %v123_v26 }
  0xab   :  { %v226_v30 = vmul.f32 1.442695, %v220_v28 }
  0xac   :  { %v192_v31 = vpop.f32.mrf.mxu2 }
  0xad   :  { %635 = vpow2.f32 %v226_v30  ;;  %v193_v32 = vadd.f32 %v192_v31, %v158_v29 }
  0xaf   :  { %v125_v33 = vpop.f32.mrf.mxu0  ;;  %v208_v34 = vmin.f32 %v193_v32, 0.0  ;;  %vm251_vm3 = vcmp.gt.f32.partialorder %v193_v32, 0.0 }
  0xb0   :  { %v126_v35 = vadd.f32 %v948_v14, %v125_v33  ;;  %v160_v36 = vpop.f32.mrf.mxu1  ;;  %v379_v33 = vld [vmem:[%s1030_s5 + $0x18] sm:$0xff] }
  0xb1   :  { %v221_v37 = vmul.f32 %v951_v23, %v208_v34  ;;  %415 = vmatpush.msrb.mxu3 %v379_v33  ;;  %v378_v34 = vld [vmem:[%s1030_s5 + $0x10] sm:$0xff] }
  0xb2   :  { %v161_v38 = vadd.f32 %v160_v36, %v126_v35  ;;  %v377_v35 = vld [vmem:[%s1030_s5 + $0x8] sm:$0xff]  ;;  %v376_v36 = vld [vmem:[%s1030_s5] sm:$0xff] }
  0xb3   :  { %v636_v39 = vpop.eup %635  ;;  %v228_v40 = vmul.f32 1.442695, %v221_v37  ;;  %416 = vmatpush.msrb.mxu3 %v378_v34  ;;  %v630_v37 = vld [vmem:[%s1027_s4] ss:$0 sm:$0xff] }
  0xb4   :  { %v195_v41 = vpop.f32.mrf.mxu2  ;;  %v587_v42 = vadd.f32 -1.0, %v636_v39 }
  0xb5   :  { %637 = vpow2.f32 %v228_v40  ;;  %v196_v43 = vadd.f32 %v195_v41, %v161_v38  ;;  %417 = vmatpush.msrb.mxu3 %v377_v35 }
  0xb6   :  { %v244_v45 = vmul.f32 0.1, %v587_v42 }
  0xb7   :  { %v128_v44 = vpop.f32.mrf.mxu0  ;;  %v209_v46 = vmin.f32 %v196_v43, 0.0  ;;  %vm252_vm4 = vcmp.gt.f32.partialorder %v196_v43, 0.0  ;;  %418 = vmatpush.msrb.mxu3 %v376_v36 }
  0xb8   :  { %v129_v47 = vadd.f32 %v948_v14, %v128_v44  ;;  %v256_v48 = vsel %vm250_vm2, %v190_v22, %v244_v45  ;;  %v163_v49 = vpop.f32.mrf.mxu1 }
  0xb9   :  { %v222_v50 = vmul.f32 %v951_v23, %v209_v46  ;;  %593 = vmatmul.msk.f32.vlgmr.msra.gmra.mxu3 %vm274_vm1, %v256_v48 }
  0xba   :  { %v164_v51 = vadd.f32 %v163_v49, %v129_v47 }
  0xbb   :  { %v638_v52 = vpop.eup %637  ;;  %v230_v53 = vmul.f32 1.442695, %v222_v50 }
  0xbc   :  { %v198_v54 = vpop.f32.mrf.mxu2  ;;  %v588_v55 = vadd.f32 -1.0, %v638_v52 }
  0xbd   :  { %639 = vpow2.f32 %v230_v53  ;;  %v199_v56 = vadd.f32 %v198_v54, %v164_v51 }
  0xbe   :  { %v245_v58 = vmul.f32 0.1, %v588_v55 }
  0xbf   :  { %v131_v57 = vpop.f32.mrf.mxu0  ;;  %v210_v59 = vmin.f32 %v199_v56, 0.0  ;;  %vm253_vm5 = vcmp.gt.f32.partialorder %v199_v56, 0.0 }
  0xc0   :  { %v132_v60 = vadd.f32 %v948_v14, %v131_v57  ;;  %v257_v61 = vsel %vm251_vm3, %v193_v32, %v245_v58  ;;  %v166_v62 = vpop.f32.mrf.mxu1 }
  0xc1   :  { %v223_v63 = vmul.f32 %v951_v23, %v210_v59  ;;  %594 = vmatmul.msk.f32.gmra.mxu3 %vm274_vm1, %v257_v61 }
  0xc2   :  { %v167_v0 = vadd.f32 %v166_v62, %v132_v60 }
  0xc3   :  { %v640_v1 = vpop.eup %639  ;;  %v232_v2 = vmul.f32 1.442695, %v223_v63 }
  0xc4   :  { %v201_v3 = vpop.f32.mrf.mxu2  ;;  %v589_v4 = vadd.f32 -1.0, %v640_v1 }
  0xc5   :  { %641 = vpow2.f32 %v232_v2  ;;  %v202_v5 = vadd.f32 %v201_v3, %v167_v0 }
  0xc6   :  { %v246_v7 = vmul.f32 0.1, %v589_v4 }
  0xc7   :  { %v134_v6 = vpop.f32.mrf.mxu0  ;;  %v211_v8 = vmin.f32 %v202_v5, 0.0  ;;  %vm254_vm6 = vcmp.gt.f32.partialorder %v202_v5, 0.0 }
  0xc8   :  { %v135_v9 = vadd.f32 %v948_v14, %v134_v6  ;;  %v258_v10 = vsel %vm252_vm4, %v196_v43, %v246_v7  ;;  %v169_v11 = vpop.f32.mrf.mxu1 }
  0xc9   :  { %v224_v12 = vmul.f32 %v951_v23, %v211_v8  ;;  %595 = vmatmul.msk.f32.gmra.mxu3 %vm274_vm1, %v258_v10 }
  0xca   :  { %v170_v13 = vadd.f32 %v169_v11, %v135_v9 }
  0xcb   :  { %v642_v15 = vpop.eup %641  ;;  %v234_v16 = vmul.f32 1.442695, %v224_v12 }
  0xcc   :  { %v204_v17 = vpop.f32.mrf.mxu2  ;;  %v590_v18 = vadd.f32 -1.0, %v642_v15 }
  0xcd   :  { %643 = vpow2.f32 %v234_v16  ;;  %v205_v19 = vadd.f32 %v204_v17, %v170_v13 }
  0xce   :  { %v247_v20 = vmul.f32 0.1, %v590_v18 }
  0xcf   :  { %v212_v21 = vmin.f32 %v205_v19, 0.0  ;;  %vm255_vm7 = vcmp.gt.f32.partialorder %v205_v19, 0.0 }
  0xd0   :  { %v259_v22 = vsel %vm253_vm5, %v199_v56, %v247_v20 }
  0xd1   :  { %v225_v14 = vmul.f32 %v951_v23, %v212_v21  ;;  %596 = vmatmul.msk.f32.gmra.mxu3 %vm274_vm1, %v259_v22 }
  0xd3   :  { %v644_v24 = vpop.eup %643  ;;  %v236_v25 = vmul.f32 1.442695, %v225_v14 }
  0xd4   :  { %v591_v26 = vadd.f32 -1.0, %v644_v24 }
  0xd5   :  { %645 = vpow2.f32 %v236_v25 }
  0xd6   :  { %v248_v27 = vmul.f32 0.1, %v591_v26 }
  0xd8   :  { %v260_v28 = vsel %vm254_vm6, %v202_v5, %v248_v27 }
  0xd9   :  { %597 = vmatmul.msk.f32.gmra.mxu3 %vm274_vm1, %v260_v28 }
  0xdb   :  { %v646_v29 = vpop.eup %645 }
  0xdc   :  { %v592_v30 = vadd.f32 -1.0, %v646_v29  ;;  %v487_v29 = vld [vmem:[%s1032_s7 + $0x8] sm:$0xff] }
  0xdd   :  { %525 = vmatpush.msrb.mxu0 %v487_v29  ;;  %625 = vmatpush.msrb.mxu2 %v487_v29  ;;  %v632_v29 = vld [vmem:[%s1031_s8] ss:$0 sm:$0xff] }
  0xde   :  { %v249_v31 = vmul.f32 0.1, %v592_v30  ;;  %v486_v30 = vld [vmem:[%s1032_s7] sm:$0xff] }
  0xdf   :  { %526 = vmatpush.msrb.mxu0 %v486_v30  ;;  %626 = vmatpush.msrb.mxu2 %v486_v30 }
  0xe0   :  { %v261_v32 = vsel %vm255_vm7, %v205_v19, %v249_v31  ;;  %v631_v31 = vld [vmem:[%s1029_s6] ss:$0 sm:$0xff] }
  0xe1   :  { %598 = vmatmul.msk.f32.gmra.mxu3 %vm274_vm1, %v261_v32 }
 0x13c   :  { %v310_v38 = vpop.f32.mrf.mxu3 }
 0x13d   :  { %v311_v39 = vadd.f32 %v630_v37, %v310_v38 }
 0x13f   :  { %v328_v40 = vmin.f32 %v311_v39, 0.0  ;;  %vm364_vm9 = vcmp.gt.f32.partialorder %v311_v39, 0.0 }
 0x141   :  { %v334_v41 = vmul.f32 %v328_v40, %v951_v23 }
 0x143   :  { %v340_v42 = vmul.f32 1.442695, %v334_v41 }
 0x144   :  { %v313_v43 = vpop.f32.mrf.mxu3 }
 0x145   :  { %647 = vpow2.f32 %v340_v42  ;;  %v314_v44 = vadd.f32 %v630_v37, %v313_v43 }
 0x147   :  { %v329_v45 = vmin.f32 %v314_v44, 0.0  ;;  %vm365_vm10 = vcmp.gt.f32.partialorder %v314_v44, 0.0 }
 0x149   :  { %v335_v46 = vmul.f32 %v329_v45, %v951_v23 }
 0x14b   :  { %v648_v47 = vpop.eup %647  ;;  %v342_v48 = vmul.f32 1.442695, %v335_v46 }
 0x14c   :  { %v316_v49 = vpop.f32.mrf.mxu3  ;;  %v599_v50 = vadd.f32 -1.0, %v648_v47 }
 0x14d   :  { %649 = vpow2.f32 %v342_v48  ;;  %v317_v51 = vadd.f32 %v630_v37, %v316_v49 }
 0x14e   :  { %v358_v52 = vmul.f32 0.1, %v599_v50 }
 0x14f   :  { %v330_v53 = vmin.f32 %v317_v51, 0.0  ;;  %vm366_vm11 = vcmp.gt.f32.partialorder %v317_v51, 0.0 }
 0x150   :  { %v370_v54 = vsel %vm364_vm9, %v311_v39, %v358_v52  ;;  %vm557_vm9 = vcmask 392192  }
 0x151   :  { %v336_v55 = vmul.f32 %v330_v53, %v951_v23  ;;  %605 = vmatmul.msk.f32.vlgmr.msrb.gmra.mxu3 %vm384_vm8, %v370_v54 }
 0x153   :  { %v650_v56 = vpop.eup %649  ;;  %v344_v57 = vmul.f32 1.442695, %v336_v55 }
 0x154   :  { %v319_v58 = vpop.f32.mrf.mxu3  ;;  %v600_v59 = vadd.f32 -1.0, %v650_v56 }
 0x155   :  { %651 = vpow2.f32 %v344_v57  ;;  %v320_v60 = vadd.f32 %v630_v37, %v319_v58 }
 0x156   :  { %v359_v61 = vmul.f32 0.1, %v600_v59 }
 0x157   :  { %v331_v62 = vmin.f32 %v320_v60, 0.0  ;;  %vm367_vm12 = vcmp.gt.f32.partialorder %v320_v60, 0.0 }
 0x158   :  { %v371_v63 = vsel %vm365_vm10, %v314_v44, %v359_v61  ;;  %vm581_vm10 = vcmask 23552  }
 0x159   :  { %v337_v0 = vmul.f32 %v331_v62, %v951_v23  ;;  %606 = vmatmul.msk.f32.gmra.mxu3 %vm384_vm8, %v371_v63 }
 0x15b   :  { %v652_v1 = vpop.eup %651  ;;  %v346_v2 = vmul.f32 1.442695, %v337_v0 }
 0x15c   :  { %v322_v3 = vpop.f32.mrf.mxu3  ;;  %v601_v4 = vadd.f32 -1.0, %v652_v1 }
 0x15d   :  { %653 = vpow2.f32 %v346_v2  ;;  %v323_v5 = vadd.f32 %v630_v37, %v322_v3 }
 0x15e   :  { %v360_v6 = vmul.f32 0.1, %v601_v4 }
 0x15f   :  { %v332_v7 = vmin.f32 %v323_v5, 0.0  ;;  %vm368_vm13 = vcmp.gt.f32.partialorder %v323_v5, 0.0 }
 0x160   :  { %v372_v8 = vsel %vm366_vm11, %v317_v51, %v360_v6 }
 0x161   :  { %v338_v9 = vmul.f32 %v332_v7, %v951_v23  ;;  %607 = vmatmul.msk.f32.gmra.mxu3 %vm384_vm8, %v372_v8 }
 0x163   :  { %v654_v10 = vpop.eup %653  ;;  %v348_v11 = vmul.f32 1.442695, %v338_v9 }
 0x164   :  { %v325_v12 = vpop.f32.mrf.mxu3  ;;  %v602_v13 = vadd.f32 -1.0, %v654_v10 }
 0x165   :  { %655 = vpow2.f32 %v348_v11  ;;  %v326_v15 = vadd.f32 %v630_v37, %v325_v12 }
 0x166   :  { %v361_v16 = vmul.f32 0.1, %v602_v13 }
 0x167   :  { %v333_v17 = vmin.f32 %v326_v15, 0.0  ;;  %vm369_vm14 = vcmp.gt.f32.partialorder %v326_v15, 0.0 }
 0x168   :  { %v373_v18 = vsel %vm367_vm12, %v320_v60, %v361_v16 }
 0x169   :  { %v339_v19 = vmul.f32 %v333_v17, %v951_v23  ;;  %608 = vmatmul.msk.f32.gmra.mxu3 %vm384_vm8, %v373_v18 }
 0x16b   :  { %v656_v20 = vpop.eup %655  ;;  %v350_v21 = vmul.f32 1.442695, %v339_v19 }
 0x16c   :  { %v603_v22 = vadd.f32 -1.0, %v656_v20 }
 0x16d   :  { %657 = vpow2.f32 %v350_v21 }
 0x16e   :  { %v362_v14 = vmul.f32 0.1, %v603_v22 }
 0x170   :  { %v374_v24 = vsel %vm368_vm13, %v323_v5, %v362_v14 }
 0x171   :  { %609 = vmatmul.msk.f32.gmra.mxu3 %vm384_vm8, %v374_v24  ;;  %v546_v24 = vlaneseq }
 0x173   :  { %v658_v25 = vpop.eup %657 }
 0x174   :  { %v604_v26 = vadd.f32 -1.0, %v658_v25 }
 0x176   :  { %v363_v27 = vmul.f32 0.1, %v604_v26  ;;  %v549_v26 = vshrl.u32 %v546_v24, 7 }
 0x178   :  { %v375_v28 = vsel %vm369_vm14, %v326_v15, %v363_v27 }
 0x179   :  { %610 = vmatmul.msk.f32.gmra.mxu3 %vm384_vm8, %v375_v28  ;;  %v550_v28 = vmul.u32 6, %v549_v26 }
 0x1d4   :  { %v420_v32 = vpop.f32.mrf.mxu3 }
 0x1d5   :  { %v421_v33 = vadd.f32 %v631_v31, %v420_v32  ;;  %v547_v32 = vand.u32 127, %v546_v24 }
 0x1d7   :  { %v438_v34 = vmin.f32 %v421_v33, 0.0  ;;  %vm474_vm0 = vcmp.gt.f32.partialorder %v421_v33, 0.0  ;;  %vm551_vm6 = vcmp.ge.s32.totalorder %v547_v32, %v550_v28 }
 0x1d9   :  { %v444_v35 = vmul.f32 %v438_v34, %v951_v23 }
 0x1db   :  { %v450_v36 = vmul.f32 1.442695, %v444_v35 }
 0x1dc   :  { %v423_v37 = vpop.f32.mrf.mxu3 }
 0x1dd   :  { %659 = vpow2.f32 %v450_v36  ;;  %v424_v38 = vadd.f32 %v631_v31, %v423_v37 }
 0x1df   :  { %v439_v39 = vmin.f32 %v424_v38, 0.0  ;;  %vm475_vm1 = vcmp.gt.f32.partialorder %v424_v38, 0.0 }
 0x1e1   :  { %v445_v40 = vmul.f32 %v439_v39, %v951_v23 }
 0x1e3   :  { %v660_v41 = vpop.eup %659  ;;  %v452_v42 = vmul.f32 1.442695, %v445_v40  ;;  %v672_v40 = vmov 0.0  }
 0x1e4   :  { %v426_v43 = vpop.f32.mrf.mxu3  ;;  %v611_v44 = vadd.f32 -1.0, %v660_v41 }
 0x1e5   :  { %661 = vpow2.f32 %v452_v42  ;;  %v427_v45 = vadd.f32 %v631_v31, %v426_v43 }
 0x1e6   :  { %v468_v46 = vmul.f32 0.1, %v611_v44 }
 0x1e7   :  { %v440_v47 = vmin.f32 %v427_v45, 0.0  ;;  %vm476_vm2 = vcmp.gt.f32.partialorder %v427_v45, 0.0 }
 0x1e8   :  { %v480_v48 = vsel %vm474_vm0, %v421_v33, %v468_v46  ;;  %v552_v33 = vadd.s32 6, %v550_v28 }
 0x1e9   :  { %v446_v49 = vmul.f32 %v440_v47, %v951_v23  ;;  %617 = vmatmul.msk.f32.vlgmr.msrb.gmra.mxu0 %vm492_vm15, %v480_v48 }
 0x1ea   :  { %vm553_vm7 = vcmp.lt.s32.totalorder %v547_v32, %v552_v33 }
 0x1eb   :  { %v662_v50 = vpop.eup %661  ;;  %v454_v51 = vmul.f32 1.442695, %v446_v49  ;;  %vm554_vm8 = vmand %vm551_vm6, %vm553_vm7 }
 0x1ec   :  { %v429_v52 = vpop.f32.mrf.mxu3  ;;  %v612_v53 = vadd.f32 -1.0, %v662_v50  ;;  %v623_v41 = vsel %vm554_vm8, 1.0, %v672_v40 }
 0x1ed   :  { %663 = vpow2.f32 %v454_v51  ;;  %v430_v54 = vadd.f32 %v631_v31, %v429_v52 }
 0x1ee   :  { %v469_v55 = vmul.f32 0.1, %v612_v53 }
 0x1ef   :  { %v441_v56 = vmin.f32 %v430_v54, 0.0  ;;  %vm477_vm3 = vcmp.gt.f32.partialorder %v430_v54, 0.0 }
 0x1f0   :  { %v481_v57 = vsel %vm475_vm1, %v424_v38, %v469_v55 }
 0x1f1   :  { %v447_v58 = vmul.f32 %v441_v56, %v951_v23  ;;  %618 = vmatmul.msk.f32.gmra.mxu0 %vm492_vm15, %v481_v57 }
 0x1f3   :  { %v664_v59 = vpop.eup %663  ;;  %v456_v60 = vmul.f32 1.442695, %v447_v58 }
 0x1f4   :  { %v432_v61 = vpop.f32.mrf.mxu3  ;;  %v613_v62 = vadd.f32 -1.0, %v664_v59 }
 0x1f5   :  { %665 = vpow2.f32 %v456_v60  ;;  %v433_v63 = vadd.f32 %v631_v31, %v432_v61 }
 0x1f6   :  { %v470_v0 = vmul.f32 0.1, %v613_v62 }
 0x1f7   :  { %v442_v1 = vmin.f32 %v433_v63, 0.0  ;;  %vm478_vm4 = vcmp.gt.f32.partialorder %v433_v63, 0.0 }
 0x1f8   :  { %v482_v2 = vsel %vm476_vm2, %v427_v45, %v470_v0 }
 0x1f9   :  { %v448_v3 = vmul.f32 %v442_v1, %v951_v23  ;;  %619 = vmatmul.msk.f32.gmra.mxu0 %vm492_vm15, %v482_v2 }
 0x1fb   :  { %v666_v4 = vpop.eup %665  ;;  %v458_v5 = vmul.f32 1.442695, %v448_v3 }
 0x1fc   :  { %v435_v6 = vpop.f32.mrf.mxu3  ;;  %v614_v7 = vadd.f32 -1.0, %v666_v4 }
 0x1fd   :  { %667 = vpow2.f32 %v458_v5  ;;  %v436_v8 = vadd.f32 %v631_v31, %v435_v6 }
 0x1fe   :  { %v471_v9 = vmul.f32 0.1, %v614_v7 }
 0x1ff   :  { %v443_v10 = vmin.f32 %v436_v8, 0.0  ;;  %vm479_vm5 = vcmp.gt.f32.partialorder %v436_v8, 0.0 }
 0x200   :  { %v483_v11 = vsel %vm477_vm3, %v430_v54, %v471_v9 }
 0x201   :  { %v449_v12 = vmul.f32 %v443_v10, %v951_v23  ;;  %620 = vmatmul.msk.f32.vlgmr.msrb.gmra.mxu2 %vm492_vm15, %v483_v11 }
 0x203   :  { %v668_v13 = vpop.eup %667  ;;  %v460_v15 = vmul.f32 1.442695, %v449_v12 }
 0x204   :  { %v615_v16 = vadd.f32 -1.0, %v668_v13 }
 0x205   :  { %669 = vpow2.f32 %v460_v15 }
 0x206   :  { %v472_v17 = vmul.f32 0.1, %v615_v16 }
 0x208   :  { %v484_v18 = vsel %vm478_vm4, %v433_v63, %v472_v17 }
 0x209   :  { %621 = vmatmul.msk.f32.gmra.mxu2 %vm492_vm15, %v484_v18 }
 0x20b   :  { %v670_v19 = vpop.eup %669 }
 0x20c   :  { %v616_v20 = vadd.f32 -1.0, %v670_v19 }
 0x20e   :  { %v473_v21 = vmul.f32 0.1, %v616_v20 }
 0x210   :  { %v485_v22 = vsel %vm479_vm5, %v436_v8, %v473_v21 }
 0x211   :  { %622 = vmatmul.msk.f32.gmra.mxu2 %vm492_vm15, %v485_v22 }
 0x266   :  { %v528_v14 = vpop.f32.mrf.mxu0 }
 0x267   :  { %v529_v39 = vadd.f32 %v632_v29, %v528_v14 }
 0x26e   :  { %v531_v27 = vpop.f32.mrf.mxu0 }
 0x26f   :  { %v532_v38 = vadd.f32 %v632_v29, %v531_v27 }
 0x276   :  { %v534_v35 = vpop.f32.mrf.mxu0 }
 0x277   :  { %v535_v37 = vadd.f32 %v632_v29, %v534_v35 }
 0x284   :  { %v537_v23 = vpop.f32.mrf.mxu2 }
 0x285   :  { %v538_v36 = vadd.f32 %v632_v29, %v537_v23 }
 0x28c   :  { %v540_v25 = vpop.f32.mrf.mxu2 }
 0x28d   :  { %v541_v34 = vadd.f32 %v632_v29, %v540_v25 }
 0x294   :  { %v543_v30 = vpop.f32.mrf.mxu2 }
 0x295   :  { %v544_v31 = vadd.f32 %v632_v29, %v543_v30 }
 0x297   :  { %571 = vmatpush.msrb.mxu1 %v544_v31 }
 0x299   :  { %572 = vmatpush.msrb.mxu1 %v541_v34 }
 0x29b   :  { %573 = vmatpush.msrb.mxu1 %v538_v36 }
 0x29d   :  { %574 = vmatpush.msrb.mxu1 %v535_v37 }
 0x29f   :  { %575 = vmatpush.msrb.mxu1 %v532_v38 }
 0x2a1   :  { %576 = vmatpush.msrb.mxu1 %v529_v39 }
 0x2a2   :  { %624 = vmatmul.msk.f32.vlgmr.msrb.gmra.mxu1 %vm557_vm9, %v623_v41 }
 0x31f   :  { %v578_v42 = vpop.f32.mrf.mxu1 }
 0x320   :  { %582 = vst.msk [vmem:[%s1033_s9] sm:$0xff] %vm581_vm10, %v578_v42 }

</bundles_post_ra>
